<compile_context>
chip_gen: v7x
topology: tpu7x:2x2x1
jax: 0.10.0
libtpu: 0.0.40
codegen_flags: <defaults>
</compile_context>

<pallas_src>
import jax
import jax.numpy as jnp
from jax.experimental import pallas as pl
from jax.experimental.pallas import tpu as pltpu


def _round_up(x, m):
    return ((x + m - 1) // m) * m


def _block_diag(w, h):
    """(r, c) -> (h*r, h*c) with h copies of w on the diagonal."""
    r, c = w.shape
    out = jnp.zeros((h, r, h, c), w.dtype)
    idx = jnp.arange(h)
    out = out.at[idx, :, idx, :].set(w)
    return out.reshape(h * r, h * c)


# -----------------------------------------------------------------------------
# Fused kernel: 4 matmuls + 2 ReLUs per row tile.
#   x_ref : (tn, h*d_in)
#   w1/b1 : block-diag shared_encoder layer 1   (h*d_in, h*d_hs), (1, h*d_hs)
#   w2/b2 : block-diag shared_encoder layer 2   (h*d_hs, h*d_share), (1, h*d_share)
#   w3/b3 : osi layer 1                         (h*d_share, d_ho), (1, d_ho)
#   w4/b4 : osi layer 2                         (d_ho, d_param), (1, d_param)
# -----------------------------------------------------------------------------
def _osi_fused_kernel(x_ref, w1_ref, b1_ref, w2_ref, b2_ref,
                      w3_ref, b3_ref, w4_ref, b4_ref, o_ref):
    dot_dtype = w1_ref.dtype          # f32 or bf16 (MXU operands)

    x = x_ref[...].astype(dot_dtype)
    h1 = jnp.dot(x, w1_ref[...], preferred_element_type=jnp.float32) + b1_ref[...]
    h1 = jnp.maximum(h1, 0.0)                                   # ReLU in f32 (VPU)

    feat = (jnp.dot(h1.astype(dot_dtype), w2_ref[...],
                    preferred_element_type=jnp.float32) + b2_ref[...])

    h2 = (jnp.dot(feat.astype(dot_dtype), w3_ref[...],
                  preferred_element_type=jnp.float32) + b3_ref[...])
    h2 = jnp.maximum(h2, 0.0)

    out = (jnp.dot(h2.astype(dot_dtype), w4_ref[...],
                   preferred_element_type=jnp.float32) + b4_ref[...])
    o_ref[...] = out.astype(o_ref.dtype)


# -----------------------------------------------------------------------------
# Parameter packing: fold the per-timestep shared encoder into block-diagonal
# weights once; cast MXU operands to dot_dtype (bf16 on v6e/v7x), biases in f32.
# -----------------------------------------------------------------------------
def pack_params(params, h, dot_dtype=jnp.bfloat16):
    return dict(
        w1=_block_diag(params["se_w1"], h).astype(dot_dtype),
        b1=jnp.tile(params["se_b1"], (1, h)).astype(jnp.float32),
        w2=_block_diag(params["se_w2"], h).astype(dot_dtype),
        b2=jnp.tile(params["se_b2"], (1, h)).astype(jnp.float32),
        w3=params["osi_w1"].astype(dot_dtype),       # (h*d_share, d_hidden_osi)
        b3=params["osi_b1"].astype(jnp.float32),
        w4=params["osi_w2"].astype(dot_dtype),       # (d_hidden_osi, d_param)
        b4=params["osi_b2"].astype(jnp.float32),
    )


# -----------------------------------------------------------------------------
# Forward pass.
# -----------------------------------------------------------------------------
def osi_forward(x, packed, *, block_n=512):
    """x: (N, h, d_in) float32 -> (N, d_param) float32. Mirrors OSI.forward."""
    N, h, d_in = x.shape
    d_param = packed["w4"].shape[1]
    out_dtype = x.dtype

    # (N, h, d_in) -> (N, h*d_in): free contiguous view; the feat.view reshape
    # is absorbed into the block-diagonal weight column ordering.
    x2 = x.reshape(N, h * d_in)

    # Row tiling.  Always use >= 2 tiles so a "parallel" grid actually feeds
    # both TensorCores on v7x; for large N use ~block_n rows per tile, sized to
    # minimize last-tile padding.
    n_tiles = max(2, pl.cdiv(N, block_n))
    tn = _round_up(pl.cdiv(N, n_tiles), 8)
    n_pad = tn * n_tiles
    if n_pad != N:
        x2 = jnp.zeros((n_pad, h * d_in), x2.dtype).at[:N].set(x2)

    def const(a):
        s = a.shape
        return pl.BlockSpec(s, lambda i, s=s: (0,) * len(s))

    # Real (unpadded) work for the XLA scheduler.
    macs_per_row = (packed["w1"].size // h        # h * d_in * d_hidden_shared
                    + packed["w2"].size // h      # h * d_hidden_shared * d_share
                    + packed["w3"].size           # h*d_share * d_hidden_osi
                    + packed["w4"].size)          # d_hidden_osi * d_param
    flops = 2 * N * int(macs_per_row)
    bytes_accessed = (int(x.size) * x.dtype.itemsize
                      + sum(int(v.size) * v.dtype.itemsize for v in packed.values())
                      + N * d_param * jnp.dtype(out_dtype).itemsize)

    out = pl.pallas_call(
        _osi_fused_kernel,
        out_shape=jax.ShapeDtypeStruct((n_pad, d_param), out_dtype),
        grid_spec=pltpu.PrefetchScalarGridSpec(
            num_scalar_prefetch=0,
            grid=(n_tiles,),
            in_specs=[
                pl.BlockSpec((tn, h * d_in), lambda i: (i, 0)),
                const(packed["w1"]), const(packed["b1"]),
                const(packed["w2"]), const(packed["b2"]),
                const(packed["w3"]), const(packed["b3"]),
                const(packed["w4"]), const(packed["b4"]),
            ],
            out_specs=pl.BlockSpec((tn, d_param), lambda i: (i, 0)),
        ),
        compiler_params=pltpu.CompilerParams(
            dimension_semantics=("parallel",)),
        cost_estimate=pl.CostEstimate(
            flops=int(flops), transcendentals=0,
            bytes_accessed=int(bytes_accessed)),
    )(x2, packed["w1"], packed["b1"], packed["w2"], packed["b2"],
      packed["w3"], packed["b3"], packed["w4"], packed["b4"])

    return out[:N]


# -----------------------------------------------------------------------------
# Init + pure-JAX reference (for correctness check).
# -----------------------------------------------------------------------------
def init_params(key, d_in, d_param, d_share, d_hidden_shared, d_hidden_osi, h):
    """PyTorch-Linear-style init: U(-1/sqrt(fan_in), 1/sqrt(fan_in))."""
    ks = jax.random.split(key, 8)

    def lin(kw, kb, fan_in, fan_out):
        bound = 1.0 / jnp.sqrt(fan_in)
        w = jax.random.uniform(kw, (fan_in, fan_out), jnp.float32, -bound, bound)
        b = jax.random.uniform(kb, (1, fan_out), jnp.float32, -bound, bound)
        return w, b

    se_w1, se_b1 = lin(ks[0], ks[1], d_in, d_hidden_shared)
    se_w2, se_b2 = lin(ks[2], ks[3], d_hidden_shared, d_share)
    osi_w1, osi_b1 = lin(ks[4], ks[5], d_share * h, d_hidden_osi)
    osi_w2, osi_b2 = lin(ks[6], ks[7], d_hidden_osi, d_param)
    return dict(se_w1=se_w1, se_b1=se_b1, se_w2=se_w2, se_b2=se_b2,
                osi_w1=osi_w1, osi_b1=osi_b1, osi_w2=osi_w2, osi_b2=osi_b2)


def osi_reference(x, params, h, d_in, d_share):
    N = x.shape[0]
    xs = x.reshape(N * h, d_in)
    hdn = jnp.maximum(xs @ params["se_w1"] + params["se_b1"], 0.0)
    feat = hdn @ params["se_w2"] + params["se_b2"]
    feats = feat.reshape(N, h * d_share)
    hdn2 = jnp.maximum(feats @ params["osi_w1"] + params["osi_b1"], 0.0)
    return hdn2 @ params["osi_w2"] + params["osi_b2"]


if __name__ == "__main__":
    # Small shapes consistent with OSI.__init__ / forward.
    N, h = 2, 8
    d_in, d_param, d_share = 16, 4, 8
    d_hidden_shared, d_hidden_osi = 32, 32

    key = jax.random.PRNGKey(0)
    k_x, k_p = jax.random.split(key)
    x = jax.random.normal(k_x, (N, h, d_in), jnp.float32)
    params = init_params(k_p, d_in, d_param, d_share, d_hidden_shared,
                         d_hidden_osi, h)
    ref = osi_reference(x, params, h, d_in, d_share)

    # Full-precision MXU path: tight check against the pure-JAX reference.
    packed_f32 = pack_params(params, h, dot_dtype=jnp.float32)
    out_f32 = jax.block_until_ready(osi_forward(x, packed_f32))
    assert out_f32.shape == (N, d_param), out_f32.shape
    assert jnp.allclose(out_f32, ref, atol=1e-4, rtol=1e-4), "f32 mismatch vs reference"

    # bf16-operand MXU path (preferred on v6e/v7x): f32 accumulation, looser tol.
    packed_bf16 = pack_params(params, h, dot_dtype=jnp.bfloat16)
    out_bf16 = jax.block_until_ready(osi_forward(x, packed_bf16))
    assert out_bf16.shape == (N, d_param), out_bf16.shape
    assert jnp.allclose(out_bf16, ref, atol=3e-2, rtol=3e-2), "bf16 mismatch vs reference"

    print("KERNEL_OK")
</pallas_src>

<mosaic_0001>
module attributes {stable_mosaic.version = 11 : i64} {
  func.func @_osi_fused_kernel(%arg0: i32, %arg1: memref<8x128xf32, #tpu.memory_space<vmem>>, %arg2: memref<128x256xf32, #tpu.memory_space<vmem>>, %arg3: memref<1x256xf32, #tpu.memory_space<vmem>>, %arg4: memref<256x64xf32, #tpu.memory_space<vmem>>, %arg5: memref<1x64xf32, #tpu.memory_space<vmem>>, %arg6: memref<64x32xf32, #tpu.memory_space<vmem>>, %arg7: memref<1x32xf32, #tpu.memory_space<vmem>>, %arg8: memref<32x4xf32, #tpu.memory_space<vmem>>, %arg9: memref<1x4xf32, #tpu.memory_space<vmem>>, %arg10: memref<8x4xf32, #tpu.memory_space<vmem>>) attributes {dimension_semantics = [#tpu.dimension_semantics<parallel>], iteration_bounds = array<i64: 2>, scalar_prefetch = 0 : i64, scratch_operands = 0 : i64, tpu.core_type = #tpu.core_type<tc>, window_params = [{transform_indices = @transform_0, window_bounds = array<i64: 8, 128>}, {pipeline_mode = #tpu.pipeline_mode<synchronous>, transform_indices = @transform_1, window_bounds = array<i64: 128, 256>}, {pipeline_mode = #tpu.pipeline_mode<synchronous>, transform_indices = @transform_2, window_bounds = array<i64: 1, 256>}, {pipeline_mode = #tpu.pipeline_mode<synchronous>, transform_indices = @transform_3, window_bounds = array<i64: 256, 64>}, {pipeline_mode = #tpu.pipeline_mode<synchronous>, transform_indices = @transform_4, window_bounds = array<i64: 1, 64>}, {pipeline_mode = #tpu.pipeline_mode<synchronous>, transform_indices = @transform_5, window_bounds = array<i64: 64, 32>}, {pipeline_mode = #tpu.pipeline_mode<synchronous>, transform_indices = @transform_6, window_bounds = array<i64: 1, 32>}, {pipeline_mode = #tpu.pipeline_mode<synchronous>, transform_indices = @transform_7, window_bounds = array<i64: 32, 4>}, {pipeline_mode = #tpu.pipeline_mode<synchronous>, transform_indices = @transform_8, window_bounds = array<i64: 1, 4>}, {transform_indices = @transform_9, window_bounds = array<i64: 8, 4>}]} {
    %c0 = arith.constant 0 : index
    %c0_0 = arith.constant 0 : index
    %0 = vector.load %arg1[%c0, %c0_0] : memref<8x128xf32, #tpu.memory_space<vmem>>, vector<8x128xf32>
    %c0_1 = arith.constant 0 : index
    %c0_2 = arith.constant 0 : index
    %1 = vector.load %arg2[%c0_1, %c0_2] : memref<128x256xf32, #tpu.memory_space<vmem>>, vector<128x256xf32>
    %cst = arith.constant dense<0.000000e+00> : vector<8x256xf32>
    %2 = tpu.matmul %0, %1, %cst {dimension_numbers = #tpu.dot_dimension_numbers<[1], [0], [0], [1], [0, 0, 1, 1], [], []>} : vector<8x128xf32>, vector<128x256xf32>, vector<8x256xf32> -> vector<8x256xf32>
    %c0_3 = arith.constant 0 : index
    %c0_4 = arith.constant 0 : index
    %3 = vector.load %arg3[%c0_3, %c0_4] : memref<1x256xf32, #tpu.memory_space<vmem>>, vector<1x256xf32>
    %4 = vector.broadcast %3 : vector<1x256xf32> to vector<8x256xf32>
    %5 = arith.addf %2, %4 : vector<8x256xf32>
    %cst_5 = arith.constant 0.000000e+00 : f32
    %6 = vector.broadcast %cst_5 : f32 to vector<8x256xf32>
    %7 = arith.maximumf %5, %6 : vector<8x256xf32>
    %c0_6 = arith.constant 0 : index
    %c0_7 = arith.constant 0 : index
    %8 = vector.load %arg4[%c0_6, %c0_7] : memref<256x64xf32, #tpu.memory_space<vmem>>, vector<256x64xf32>
    %cst_8 = arith.constant dense<0.000000e+00> : vector<8x64xf32>
    %9 = tpu.matmul %7, %8, %cst_8 {dimension_numbers = #tpu.dot_dimension_numbers<[1], [0], [0], [1], [0, 0, 1, 1], [], []>} : vector<8x256xf32>, vector<256x64xf32>, vector<8x64xf32> -> vector<8x64xf32>
    %c0_9 = arith.constant 0 : index
    %c0_10 = arith.constant 0 : index
    %10 = vector.load %arg5[%c0_9, %c0_10] : memref<1x64xf32, #tpu.memory_space<vmem>>, vector<1x64xf32>
    %11 = vector.broadcast %10 : vector<1x64xf32> to vector<8x64xf32>
    %12 = arith.addf %9, %11 : vector<8x64xf32>
    %c0_11 = arith.constant 0 : index
    %c0_12 = arith.constant 0 : index
    %13 = vector.load %arg6[%c0_11, %c0_12] : memref<64x32xf32, #tpu.memory_space<vmem>>, vector<64x32xf32>
    %cst_13 = arith.constant dense<0.000000e+00> : vector<8x32xf32>
    %14 = tpu.matmul %12, %13, %cst_13 {dimension_numbers = #tpu.dot_dimension_numbers<[1], [0], [0], [1], [0, 0, 1, 1], [], []>} : vector<8x64xf32>, vector<64x32xf32>, vector<8x32xf32> -> vector<8x32xf32>
    %c0_14 = arith.constant 0 : index
    %c0_15 = arith.constant 0 : index
    %15 = vector.load %arg7[%c0_14, %c0_15] : memref<1x32xf32, #tpu.memory_space<vmem>>, vector<1x32xf32>
    %16 = vector.broadcast %15 : vector<1x32xf32> to vector<8x32xf32>
    %17 = arith.addf %14, %16 : vector<8x32xf32>
    %cst_16 = arith.constant 0.000000e+00 : f32
    %18 = vector.broadcast %cst_16 : f32 to vector<8x32xf32>
    %19 = arith.maximumf %17, %18 : vector<8x32xf32>
    %c0_17 = arith.constant 0 : index
    %c0_18 = arith.constant 0 : index
    %20 = vector.load %arg8[%c0_17, %c0_18] : memref<32x4xf32, #tpu.memory_space<vmem>>, vector<32x4xf32>
    %cst_19 = arith.constant dense<0.000000e+00> : vector<8x4xf32>
    %21 = tpu.matmul %19, %20, %cst_19 {dimension_numbers = #tpu.dot_dimension_numbers<[1], [0], [0], [1], [0, 0, 1, 1], [], []>} : vector<8x32xf32>, vector<32x4xf32>, vector<8x4xf32> -> vector<8x4xf32>
    %c0_20 = arith.constant 0 : index
    %c0_21 = arith.constant 0 : index
    %22 = vector.load %arg9[%c0_20, %c0_21] : memref<1x4xf32, #tpu.memory_space<vmem>>, vector<1x4xf32>
    %23 = vector.broadcast %22 : vector<1x4xf32> to vector<8x4xf32>
    %24 = arith.addf %21, %23 : vector<8x4xf32>
    %c0_22 = arith.constant 0 : index
    %c0_23 = arith.constant 0 : index
    %25 = vector.load %arg10[%c0_22, %c0_23] : memref<8x4xf32, #tpu.memory_space<vmem>>, vector<8x4xf32>
    tpu.vector_store %arg10[%c0_22, %c0_23], %24 {strides = array<i32>} : memref<8x4xf32, #tpu.memory_space<vmem>>, vector<8x4xf32>,
    return
  }
  func.func @transform_0(%arg0: i32) -> (i32, i32) {
    %c0_i32 = arith.constant 0 : i32
    %c0_i32_0 = arith.constant 0 : i32
    return %arg0, %c0_i32 : i32, i32
  }
  func.func @transform_1(%arg0: i32) -> (i32, i32) {
    %c0_i32 = arith.constant 0 : i32
    %c0_i32_0 = arith.constant 0 : i32
    %c0_i32_1 = arith.constant 0 : i32
    return %c0_i32, %c0_i32_0 : i32, i32
  }
  func.func @transform_2(%arg0: i32) -> (i32, i32) {
    %c0_i32 = arith.constant 0 : i32
    %c0_i32_0 = arith.constant 0 : i32
    %c0_i32_1 = arith.constant 0 : i32
    return %c0_i32, %c0_i32_0 : i32, i32
  }
  func.func @transform_3(%arg0: i32) -> (i32, i32) {
    %c0_i32 = arith.constant 0 : i32
    %c0_i32_0 = arith.constant 0 : i32
    %c0_i32_1 = arith.constant 0 : i32
    return %c0_i32, %c0_i32_0 : i32, i32
  }
  func.func @transform_4(%arg0: i32) -> (i32, i32) {
    %c0_i32 = arith.constant 0 : i32
    %c0_i32_0 = arith.constant 0 : i32
    %c0_i32_1 = arith.constant 0 : i32
    return %c0_i32, %c0_i32_0 : i32, i32
  }
  func.func @transform_5(%arg0: i32) -> (i32, i32) {
    %c0_i32 = arith.constant 0 : i32
    %c0_i32_0 = arith.constant 0 : i32
    %c0_i32_1 = arith.constant 0 : i32
    return %c0_i32, %c0_i32_0 : i32, i32
  }
  func.func @transform_6(%arg0: i32) -> (i32, i32) {
    %c0_i32 = arith.constant 0 : i32
    %c0_i32_0 = arith.constant 0 : i32
    %c0_i32_1 = arith.constant 0 : i32
    return %c0_i32, %c0_i32_0 : i32, i32
  }
  func.func @transform_7(%arg0: i32) -> (i32, i32) {
    %c0_i32 = arith.constant 0 : i32
    %c0_i32_0 = arith.constant 0 : i32
    %c0_i32_1 = arith.constant 0 : i32
    return %c0_i32, %c0_i32_0 : i32, i32
  }
  func.func @transform_8(%arg0: i32) -> (i32, i32) {
    %c0_i32 = arith.constant 0 : i32
    %c0_i32_0 = arith.constant 0 : i32
    %c0_i32_1 = arith.constant 0 : i32
    return %c0_i32, %c0_i32_0 : i32, i32
  }
  func.func @transform_9(%arg0: i32) -> (i32, i32) {
    %c0_i32 = arith.constant 0 : i32
    %c0_i32_0 = arith.constant 0 : i32
    return %arg0, %c0_i32 : i32, i32
  }
}

</mosaic_0001>

<bundles_post_ra>
// kernel: tpu_custom_call.1
= control target key start
LH: loop header
LB: loop body
LE: loop exit
PB: predicated region body
PF: predicated region fallthrough
CT: control target
= control target key end

     0   :  { %s1032_s30 = smov 0   ;;  %s1309_s0 = inlined_call_operand.vmem [shape: f32[16,128], index: 0, kind: input, shape index: {}]   ;;  %s1310_s1 = inlined_call_operand.vmem [shape: f32[128,256], index: 1, kind: input, shape index: {}]   ;;  %s1311_s2 = inlined_call_operand.vmem [shape: f32[1,256], index: 2, kind: input, shape index: {}]   ;;  %s1312_s3 = inlined_call_operand.vmem [shape: f32[256,64], index: 3, kind: input, shape index: {}]   ;;  %s1313_s4 = inlined_call_operand.vmem [shape: f32[1,64], index: 4, kind: input, shape index: {}]   ;;  %s1314_s5 = inlined_call_operand.vmem [shape: f32[64,32], index: 5, kind: input, shape index: {}]   ;;  %s1315_s6 = inlined_call_operand.vmem [shape: f32[1,32], index: 6, kind: input, shape index: {}]   ;;  %s1316_s7 = inlined_call_operand.vmem [shape: f32[32,4], index: 7, kind: input, shape index: {}]   ;;  %s1317_s8 = inlined_call_operand.vmem [shape: f32[1,4], index: 8, kind: input, shape index: {}]   ;;  %s1318_s9 = inlined_call_operand.vmem [shape: f32[16,4], index: 9, kind: output, shape index: {}]  }
   0x1 LB: > { %s785_s10 = sadd.s32 4294967295, %s977_s30   ;;  %p789_p0 = scmp.ge.s32.totalorder %s977_s30, 1  ;;  %s977_s30 = sphi %s1032_s30, %s19_s30  }
   0x2   : > { %p286_p1 = scmp.lt.s32.totalorder %s977_s30, 3 }
   0x4   : > { %p287_p2 = pnand %p789_p0, %p286_p1 }
   0x5   : > { %v330_v0 = vld [vmem:[%s1310_s1 + $0x8] sm:$0xff] (!%p287_p2)  ;;  %v332_v1 = vld [vmem:[%s1310_s1 + $0x18] sm:$0xff] (!%p287_p2)  ;;  %v329_v2 = vld [vmem:[%s1310_s1] sm:$0xff] (!%p287_p2)  ;;  %v979_v7 = vmov (!%p287_p2), 0.0   ;;  %p1163_p3 = scmp.lt.s32.totalorder (!%p287_p2), %s785_s10, 1  ;;  %vm981_vm0 = vmmov (!%p287_p2), 0  }
   0x6   : > { %290 = sbr.rel (%p287_p2) target bundleno = 906 (0x38a), region = 56  ;;  %v878_v3 = vpack.c.bf16 (!%p287_p2), %v332_v1, %v330_v0  ;;  %v331_v4 = vld [vmem:[%s1310_s1 + $0x10] sm:$0xff] (!%p287_p2)  ;;  %v334_v5 = vld [vmem:[%s1310_s1 + $0x28] sm:$0xff] (!%p287_p2)  ;;  %v336_v6 = vld [vmem:[%s1310_s1 + $0x38] sm:$0xff] (!%p287_p2)  ;;  %437 = vmatprep.mubr.f32.mxu0 (!%p287_p2), %v979_v7  ;;  %vm570_vm1 = vcmask (!%p287_p2), 523264   ;;  %vm656_vm2 = vcmask (!%p287_p2), 261120  }
   0x7   : > { %v880_v8 = vpack.c.bf16 (!%p287_p2), %v331_v4, %v329_v2  ;;  %v882_v9 = vpack.c.bf16 (!%p287_p2), %v336_v6, %v334_v5  ;;  %v333_v10 = vld [vmem:[%s1310_s1 + $0x20] sm:$0xff] (!%p287_p2)  ;;  %v335_v11 = vld [vmem:[%s1310_s1 + $0x30] sm:$0xff] (!%p287_p2)  ;;  %v338_v12 = vld [vmem:[%s1310_s1 + $0x48] sm:$0xff] (!%p287_p2)  ;;  %vm730_vm3 = vcmask (!%p287_p2), 31744  }
   0x8   : > { %879 = vmatprep.subr.bf16.mxu0 (!%p287_p2), %v878_v3  ;;  %v340_v13 = vld [vmem:[%s1310_s1 + $0x58] sm:$0xff] (!%p287_p2)  ;;  %v884_v14 = vpack.c.bf16 (!%p287_p2), %v335_v11, %v333_v10  ;;  %v337_v16 = vld [vmem:[%s1310_s1 + $0x40] sm:$0xff] (!%p287_p2)  ;;  %v339_v17 = vld [vmem:[%s1310_s1 + $0x50] sm:$0xff] (!%p287_p2) }
   0x9   : > { %881 = vmatpush1.bf16.msra.mxu0 (!%p287_p2), %v880_v8  ;;  %v886_v15 = vpack.c.bf16 (!%p287_p2), %v340_v13, %v338_v12  ;;  %v342_v18 = vld [vmem:[%s1310_s1 + $0x68] sm:$0xff] (!%p287_p2)  ;;  %v344_v19 = vld [vmem:[%s1310_s1 + $0x78] sm:$0xff] (!%p287_p2)  ;;  %v888_v20 = vpack.c.bf16 (!%p287_p2), %v339_v17, %v337_v16  ;;  %v341_v22 = vld [vmem:[%s1310_s1 + $0x60] sm:$0xff] (!%p287_p2) }
   0xa   : > { %883 = vmatprep.subr.bf16.mxu0 (!%p287_p2), %v882_v9  ;;  %v890_v21 = vpack.c.bf16 (!%p287_p2), %v344_v19, %v342_v18  ;;  %v343_v23 = vld [vmem:[%s1310_s1 + $0x70] sm:$0xff] (!%p287_p2)  ;;  %v346_v24 = vld [vmem:[%s1310_s1 + $0x88] sm:$0xff] (!%p287_p2)  ;;  %v348_v25 = vld [vmem:[%s1310_s1 + $0x98] sm:$0xff] (!%p287_p2) }
   0xb   : > { %v345_v26 = vld [vmem:[%s1310_s1 + $0x80] sm:$0xff] (!%p287_p2)  ;;  %v347_v27 = vld [vmem:[%s1310_s1 + $0x90] sm:$0xff] (!%p287_p2)  ;;  %v463_v29 = vld [vmem:[%s1312_s3 + $0x88] sm:$0xff] (!%p287_p2)  ;;  %v892_v31 = vpack.c.bf16 (!%p287_p2), %v343_v23, %v341_v22  ;;  %v894_v36 = vpack.c.bf16 (!%p287_p2), %v348_v25, %v346_v24 }
   0xc   : > { %v462_v28 = vld [vmem:[%s1312_s3 + $0x80] sm:$0xff] (!%p287_p2)  ;;  %v447_v33 = vld [vmem:[%s1312_s3 + $0x8] sm:$0xff] (!%p287_p2)  ;;  %v464_v34 = vld [vmem:[%s1312_s3 + $0x90] sm:$0xff] (!%p287_p2)  ;;  %v896_v46 = vpack.c.bf16 (!%p287_p2), %v347_v27, %v345_v26 }
   0xd   : > { %885 = vmatpush1.bf16.msra.mxu0 %v884_v14  ;;  %v446_v30 = vld [vmem:[%s1312_s3] sm:$0xff]  ;;  %v910_v32 = vpack.c.bf16 %v463_v29, %v462_v28  ;;  %v465_v35 = vld [vmem:[%s1312_s3 + $0x98] sm:$0xff]  ;;  %v448_v39 = vld [vmem:[%s1312_s3 + $0x10] sm:$0xff]  ;;  %s1321_s10 = smov (!%p1163_p3, %s785_s10), 1 }
   0xe   : > { %887 = vmatprep.subr.bf16.mxu0 %v886_v15  ;;  %v912_v37 = vpack.c.bf16 %v447_v33, %v446_v30  ;;  %v914_v38 = vpack.c.bf16 %v465_v35, %v464_v34  ;;  %v449_v40 = vld [vmem:[%s1312_s3 + $0x18] sm:$0xff]  ;;  %v466_v41 = vld [vmem:[%s1312_s3 + $0xa0] sm:$0xff]  ;;  %v350_v42 = vld [vmem:[%s1310_s1 + $0xa8] sm:$0xff]  ;;  %s790_s25 = sshll.u32 %s1321_s10, 3 }
   0xf   : > { %v352_v43 = vld [vmem:[%s1310_s1 + $0xb8] sm:$0xff]  ;;  %911 = vmatprep.subr.bf16.mxu1 %v910_v32  ;;  %v467_v44 = vld [vmem:[%s1312_s3 + $0xa8] sm:$0xff]  ;;  %v916_v45 = vpack.c.bf16 %v449_v40, %v448_v39  ;;  %v349_v47 = vld [vmem:[%s1310_s1 + $0xa0] sm:$0xff]  ;;  %s323_s13 = scalar_lea.vmem %s1309_s0, %s790_s25  ;;  %s327_s29 = scalar_lea.vmem %s1318_s9, %s790_s25 }
  0x10   : > { %913 = vmatpush3.bf16.msra.mxu1 %v912_v37  ;;  %v918_v48 = vpack.c.bf16 %v467_v44, %v466_v41  ;;  %v450_v49 = vld [vmem:[%s1312_s3 + $0x20] sm:$0xff]  ;;  %v451_v50 = vld [vmem:[%s1312_s3 + $0x28] sm:$0xff]  ;;  %v898_v51 = vpack.c.bf16 %v352_v43, %v350_v42  ;;  %v351_v52 = vld [vmem:[%s1310_s1 + $0xb0] sm:$0xff] }
  0x11   : > { %889 = vmatpush1.bf16.msra.mxu0 %v888_v20  ;;  %915 = vmatprep.subr.bf16.mxu1 %v914_v38  ;;  %v468_v53 = vld [vmem:[%s1312_s3 + $0xb0] sm:$0xff]  ;;  %v469_v54 = vld [vmem:[%s1312_s3 + $0xb8] sm:$0xff]  ;;  %v354_v55 = vld [vmem:[%s1310_s1 + $0xc8] sm:$0xff]  ;;  %v920_v57 = vpack.c.bf16 %v451_v50, %v450_v49  ;;  %v900_v58 = vpack.c.bf16 %v351_v52, %v349_v47  ;;  %v980_v38 = vmov 0.0|0.0  }
  0x12   : > { %891 = vmatprep.subr.bf16.mxu0 %v890_v21  ;;  %v356_v56 = vld [vmem:[%s1310_s1 + $0xd8] sm:$0xff]  ;;  %v353_v59 = vld [vmem:[%s1310_s1 + $0xc0] sm:$0xff]  ;;  %v922_v60 = vpack.c.bf16 %v469_v54, %v468_v53  ;;  %v452_v61 = vld [vmem:[%s1312_s3 + $0x30] sm:$0xff] }
  0x13   : > { %v453_v62 = vld [vmem:[%s1312_s3 + $0x38] sm:$0xff]  ;;  %v902_v63 = vpack.c.bf16 %v356_v56, %v354_v55  ;;  %v355_v0 = vld [vmem:[%s1310_s1 + $0xd0] sm:$0xff]  ;;  %v470_v1 = vld [vmem:[%s1312_s3 + $0xc0] sm:$0xff] }
  0x14   : > { %917 = vmatpush3.bf16.msra.mxu1 %v916_v45  ;;  %v471_v2 = vld [vmem:[%s1312_s3 + $0xc8] sm:$0xff]  ;;  %v360_v4 = vld [vmem:[%s1310_s1 + $0xf8] sm:$0xff]  ;;  %v924_v5 = vpack.c.bf16 %v453_v62, %v452_v61  ;;  %v904_v6 = vpack.c.bf16 %v355_v0, %v353_v59  ;;  %v357_v8 = vld [vmem:[%s1310_s1 + $0xe0] sm:$0xff]  ;;  %v363_v45 = vlaneseq }
  0x15   : > { %893 = vmatpush1.bf16.msra.mxu0 %v892_v31  ;;  %919 = vmatprep.subr.bf16.mxu1 %v918_v48  ;;  %v358_v3 = vld [vmem:[%s1310_s1 + $0xe8] sm:$0xff]  ;;  %v926_v9 = vpack.c.bf16 %v471_v2, %v470_v1  ;;  %v454_v10 = vld [vmem:[%s1312_s3 + $0x40] sm:$0xff]  ;;  %v359_v13 = vld [vmem:[%s1310_s1 + $0xf0] sm:$0xff] }
  0x16   : > { %895 = vmatprep.subr.bf16.mxu0 %v894_v36  ;;  %v455_v11 = vld [vmem:[%s1312_s3 + $0x48] sm:$0xff]  ;;  %v906_v12 = vpack.c.bf16 %v360_v4, %v358_v3  ;;  %v472_v14 = vld [vmem:[%s1312_s3 + $0xd0] sm:$0xff]  ;;  %v473_v15 = vld [vmem:[%s1312_s3 + $0xd8] sm:$0xff]  ;;  %v908_v17 = vpack.c.bf16 %v359_v13, %v357_v8 }
  0x17   : > { %v928_v16 = vpack.c.bf16 %v455_v11, %v454_v10  ;;  %v930_v18 = vpack.c.bf16 %v473_v15, %v472_v14  ;;  %v456_v19 = vld [vmem:[%s1312_s3 + $0x50] sm:$0xff]  ;;  %v457_v20 = vld [vmem:[%s1312_s3 + $0x58] sm:$0xff]  ;;  %v474_v21 = vld [vmem:[%s1312_s3 + $0xe0] sm:$0xff] }
  0x18   : > { %921 = vmatpush3.bf16.msra.mxu1 %v920_v57  ;;  %v475_v22 = vld [vmem:[%s1312_s3 + $0xe8] sm:$0xff]  ;;  %v932_v23 = vpack.c.bf16 %v457_v20, %v456_v19  ;;  %v328_v24 = vld [vmem:[%s323_s13] sm:$0xff]  ;;  %v476_v29 = vld [vmem:[%s1312_s3 + $0xf0] sm:$0xff] }
  0x19   : > { %897 = vmatpush1.bf16.msra.mxu0 %v896_v46  ;;  %923 = vmatprep.subr.bf16.mxu1 %v922_v60  ;;  %v934_v25 = vpack.c.bf16 %v475_v22, %v474_v21  ;;  %v458_v26 = vld [vmem:[%s1312_s3 + $0x60] sm:$0xff]  ;;  %v459_v27 = vld [vmem:[%s1312_s3 + $0x68] sm:$0xff]  ;;  %v477_v30 = vld [vmem:[%s1312_s3 + $0xf8] sm:$0xff]  ;;  %v364_v46 = vshrl.u32 %v363_v45, 7 }
  0x1a   : > { %899 = vmatprep.subr.bf16.mxu0 %v898_v51  ;;  %v936_v28 = vpack.c.bf16 %v459_v27, %v458_v26  ;;  %v938_v31 = vpack.c.bf16 %v477_v30, %v476_v29  ;;  %v460_v32 = vld [vmem:[%s1312_s3 + $0x70] sm:$0xff]  ;;  %v461_v33 = vld [vmem:[%s1312_s3 + $0x78] sm:$0xff]  ;;  %v555_v35 = vld [vmem:[%s1314_s5] sm:$0xff] }
  0x1b   : > { %v940_v34 = vpack.c.bf16 %v461_v33, %v460_v32  ;;  %v556_v36 = vld [vmem:[%s1314_s5 + $0x8] sm:$0xff]  ;;  %v557_v37 = vld [vmem:[%s1314_s5 + $0x10] sm:$0xff]  ;;  %v558_v40 = vld [vmem:[%s1314_s5 + $0x18] sm:$0xff]  ;;  %v365_v47 = vsub.s32 0, %v364_v46  ;;  %v369_v49 = vsub.s32 1, %v364_v46 }
  0x1c   : > { %925 = vmatpush3.bf16.msra.mxu1 %v924_v5  ;;  %v943_v39 = vpack.c.bf16 %v556_v36, %v555_v35  ;;  %v946_v41 = vpack.c.bf16 %v558_v40, %v557_v37  ;;  %v559_v42 = vld [vmem:[%s1314_s5 + $0x20] sm:$0xff]  ;;  %v560_v43 = vld [vmem:[%s1314_s5 + $0x28] sm:$0xff]  ;;  %v562_v59 = vld [vmem:[%s1314_s5 + $0x38] sm:$0xff] }
  0x1d   : > { %901 = vmatpush1.bf16.msra.mxu0 %v900_v58  ;;  %927 = vmatprep.subr.bf16.mxu1 %v926_v9  ;;  %v949_v44 = vpack.c.bf16 %v560_v43, %v559_v42  ;;  %v361_v48 = vld [vmem:[%s1311_s2] sm:$0x3]  ;;  %v561_v58 = vld [vmem:[%s1314_s5 + $0x30] sm:$0xff]  ;;  %v646_v62 = vld [vmem:[%s1316_s7 + $0x8] sm:$0xff] }
  0x1e   : > { %903 = vmatprep.subr.bf16.mxu0 %v902_v63  ;;  %v366_v50 = vrot.slane %v361_v48, %v365_v47  ;;  %v370_v51 = vrot.slane %v361_v48, %v369_v49  ;;  %v952_v60 = vpack.c.bf16 %v562_v59, %v561_v58  ;;  %v645_v61 = vld [vmem:[%s1316_s7] sm:$0xff]  ;;  %v647_v4 = vld [vmem:[%s1316_s7 + $0x10] sm:$0xff]  ;;  %v648_v5 = vld [vmem:[%s1316_s7 + $0x18] sm:$0xff] }
  0x1f   : > { %v955_v63 = vpack.c.bf16 %v646_v62, %v645_v61  ;;  %v792_v1 = vld [vmem:[%s1313_s4] ss:$0 sm:$0xff] }
  0x20   : > { %929 = vmatpush3.bf16.msra.mxu1 %v928_v16  ;;  %v793_v8 = vld [vmem:[%s1315_s6] ss:$0 sm:$0xff] }
  0x21   : > { %905 = vmatpush1.bf16.msra.mxu0 %v904_v6  ;;  %931 = vmatprep.subr.bf16.mxu1 %v930_v18  ;;  %v958_v6 = vpack.c.bf16 %v648_v5, %v647_v4  ;;  %v795_v13 = vld [vmem:[%s1317_s8] ss:$0 sm:$0xff] }
  0x22   : > { %907 = vmatprep.subr.bf16.mxu0 %v906_v12 }
  0x24   : > { %933 = vmatpush3.bf16.msra.mxu1 %v932_v23 }
  0x25   : > { %909 = vmatpush1.bf16.msra.mxu0 %v908_v17  ;;  %935 = vmatprep.subr.bf16.mxu1 %v934_v25 }
  0x26   : > { %942 = vmatprep.subr.bf16.mxu0 %v980_v38 }
  0x28   : > { %438 = vmatmul.mubr.f32.vlgmr.msra.gmra.mrb[0].mxu0 %v328_v24  ;;  %937 = vmatpush3.bf16.msra.mxu1 %v936_v28 }
  0x29   : > { %939 = vmatprep.subr.bf16.mxu1 %v938_v31  ;;  %944 = vmatpush3.bf16.msra.mxu0 %v943_v39 }
  0x2a   : > { %945 = vmatprep.subr.bf16.mxu0 %v980_v38  ;;  %864 = vmatprep.mubr.msk.f32.mxu0 %vm981_vm0, %v979_v7 }
  0x2c   : > { %941 = vmatpush3.bf16.msra.mxu1 %v940_v34 }
  0x2d   : > { %954 = vmatprep.subr.bf16.mxu1 %v980_v38  ;;  %947 = vmatpush3.bf16.msra.mxu0 %v946_v41 }
  0x2e   : > { %948 = vmatprep.subr.bf16.mxu0 %v980_v38 }
  0x31   : > { %950 = vmatpush3.bf16.msra.mxu0 %v949_v44 }
  0x32   : > { %951 = vmatprep.subr.bf16.mxu0 %v980_v38 }
  0x35   : > { %953 = vmatpush3.bf16.msra.mxu0 %v952_v60 }
  0xfb   : > { %v439_v52 = vpop.f32.mrb[0].mxu0 }
  0xfc   : > { %v440_v53 = vadd.f32 %v439_v52, %v366_v50  ;;  %v441_v54 = vpop.f32.mrb[1].mxu0 }
  0xfd   : > { %v442_v55 = vadd.f32 %v441_v54, %v370_v51 }
  0xfe   : > { %v444_v57 = vmax.f32 %v440_v53, 0.0 }
  0xff   : > { %v445_v56 = vmax.f32 %v442_v55, 0.0 }
 0x101   : > { %549 = vmatprep.mubr.f32.mxu1 %v445_v56 }
 0x102   : > { %550 = vmatmul.mubr.f32.vlgmr.msra.gmra.mrb[0].mxu1 %v444_v57 }
 0x103   : > { %875 = vmatprep.mubr.msk.f32.mxu1 %vm981_vm0, %v979_v7  ;;  %956 = vmatpush3.bf16.msra.mxu1 %v955_v63 }
 0x104   : > { %957 = vmatprep.subr.bf16.mxu1 %v980_v38 }
 0x107   : > { %959 = vmatpush3.bf16.msra.mxu1 %v958_v6 }
 0x1d5   : > { %v831_v0 = vpop.f32.mrb[0].mxu1 }
 0x1d6   : > { %v832_v2 = vpop.f32.mrb[1].mxu1 }
 0x1d7   : > { %v833_v3 = vadd.f32 %v832_v2, %v831_v0 }
 0x1d9   : > { %v552_v7 = vadd.f32 %v833_v3, %v792_v1 }
 0x1db   : > { %865 = vmatmul.mubr.msk.f32.vlgmr.msra.gmra.mrb[2].mxu0 %vm570_vm1, %v552_v7 }
 0x2ae   : > { %v640_v9 = vpop.f32.mrb[2].mxu0 }
 0x2af   : > { %v641_v10 = vadd.f32 %v793_v8, %v640_v9  ;;  %v866_v11 = vpop.f32.mrb[3].mxu0 }
 0x2b1   : > { %v644_v12 = vmax.f32 %v641_v10, 0.0 }
 0x2b3   : > { %876 = vmatmul.mubr.msk.f32.vlgmr.msra.gmra.mrb[2].mxu1 %vm656_vm2, %v644_v12 }
 0x386   : > { %v726_v14 = vpop.f32.mrb[2].mxu1 }
 0x387   : > { %v727_v15 = vadd.f32 %v795_v13, %v726_v14  ;;  %v877_v16 = vpop.f32.mrb[3].mxu1 }
 0x389   : > { %731 = vst.msk [vmem:[%s327_s29] sm:$0xff] %vm730_vm3, %v727_v15 }
 0x38a PF: > { %s19_s30 = sadd.s32 1, %s977_s30  }
 0x38b   : > { %p16_p4 = scmp.ge.s32.totalorder %s19_s30, 4  }
 0x38d   :  { %18 = sbr.rel (!%p16_p4) target bundleno = 1 (0x1), region = 86 }

</bundles_post_ra>
